<compile_context>
chip_gen: v5e
topology: v5e:2x2
jax: 0.10.0
libtpu: 0.0.40
codegen_flags: <defaults>
</compile_context>

<pallas_src>
import jax
import jax.numpy as jnp
from jax.experimental import pallas as pl
from jax.experimental.pallas import tpu as pltpu


def _round_up(a, m):
    return ((a + m - 1) // m) * m


def _round_down(a, m):
    return (a // m) * m


def _tpu_generation():
    """Best-effort TPU generation (5, 6, 7, ...) from the device kind string."""
    try:
        dev = jax.devices()[0]
        if dev.platform != "tpu":
            return None
        kind = dev.device_kind.lower()
    except Exception:
        return None
    for tag, gen in (("v7", 7), ("v6", 6), ("v5", 5), ("v4", 4), ("v3", 3), ("v2", 2)):
        if tag in kind:
            return gen
    return None


def _choose_tiles(rows, hw, itemsize, min_sublane, *, multi_core,
                  target_block_bytes, max_hw_tile,
                  min_block_bytes=2 << 20):
    # Spatial tiling: full extent when it fits, else 128-aligned chunks.
    if hw <= max_hw_tile:
        hw_tile = hw
    else:
        hw_tile = _round_down(max_hw_tile, 128)

    # VMEM cost per row of a block: lanes are padded to a multiple of 128.
    row_bytes = _round_up(hw_tile, 128) * itemsize

    if rows <= min_sublane:
        return rows, hw_tile  # full-extent row block (always legal)

    # Biggest row tile within the per-buffer VMEM budget.
    budget_tile = max(min_sublane,
                      _round_down(target_block_bytes // row_bytes, min_sublane))
    budget_tile = min(budget_tile, _round_up(rows, min_sublane))

    row_tile = budget_tile
    if multi_core:
        # Only on multi-TensorCore parts (v7x+) is it worth splitting rows so
        # both cores get work — and never below ~2 MiB blocks (small tiles
        # fall well off the HBM roofline).
        min_block_tile = max(min_sublane,
                             _round_down(min_block_bytes // row_bytes, min_sublane))
        t8 = _round_down(rows // 8, min_sublane)  # tile giving ~>=8 row steps
        t2 = _round_down(rows // 2, min_sublane)  # tile giving ~>=2 row steps
        if t8 >= min_block_tile:
            row_tile = min(budget_tile, t8)
        elif t2 >= min_block_tile:
            row_tile = min(budget_tile, t2)

    if row_tile >= rows:
        row_tile = rows                           # full-extent block, always legal
    return row_tile, hw_tile


def _make_min_kernel(hw, hw_tile, num_hw_tiles, identity):
    # Ragged spatial tail only exists when hw was actually tiled.
    mask_hw_tail = (num_hw_tiles > 1) and (hw % hw_tile != 0)

    def kernel(x_ref, o_ref):
        k = pl.program_id(1)

        def tile_min(mask_tail):
            x = x_ref[...]
            if mask_tail:
                # Mask the ragged spatial tail with the min identity.
                col = k * hw_tile + jax.lax.broadcasted_iota(jnp.int32, x.shape, 1)
                x = jnp.where(col < hw, x, jnp.asarray(identity, dtype=x.dtype))
            return jnp.min(x, axis=-1, keepdims=True)

        if num_hw_tiles == 1:
            # Single spatial step: one reduce, one store.
            o_ref[...] = tile_min(False)
            return

        # o_ref's block is resident across the hw axis -> accumulate into it.
        @pl.when(k == 0)
        def _first():
            o_ref[...] = tile_min(False)

        if mask_hw_tail:
            # Steady state: no mask. Only the peeled last step pays for the
            # iota/compare/select.
            @pl.when(jnp.logical_and(k > 0, k < num_hw_tiles - 1))
            def _body():
                o_ref[...] = jnp.minimum(o_ref[...], tile_min(False))

            @pl.when(k == num_hw_tiles - 1)
            def _tail():
                o_ref[...] = jnp.minimum(o_ref[...], tile_min(True))
        else:
            @pl.when(k > 0)
            def _body():
                o_ref[...] = jnp.minimum(o_ref[...], tile_min(False))

    return kernel


def global_min_pool2d(x, *, min_pallas_bytes=2 << 20):
    """GlobalMinPool2d: (B, C, H, W) -> (B, C, 1, 1), min over spatial dims."""
    B, C, H, W = x.shape
    rows = B * C
    hw = H * W
    dtype = x.dtype

    def _jnp_fallback():
        return jnp.min(x.reshape(B, C, hw), axis=-1, keepdims=True)[..., None]

    # Min is exact in the native dtype, so reduce without up-casting.
    if dtype in (jnp.dtype(jnp.float32), jnp.dtype(jnp.bfloat16),
                 jnp.dtype(jnp.float16)):
        identity = float("inf")
    elif dtype == jnp.dtype(jnp.int32):
        identity = int(jnp.iinfo(jnp.int32).max)
    else:
        # TODO(synk): f64 / narrow-int inputs use the XLA reduction (avoids a
        # silent precision-losing cast and untested narrow-int lowering).
        return _jnp_fallback()

    # Small inputs: launch + pipeline prologue overhead dominates; XLA's fused
    # bandwidth-bound reduce is already competitive below a few MiB.
    if rows * hw * dtype.itemsize < min_pallas_bytes:
        return _jnp_fallback()

    x2d = x.reshape(rows, hw)

    itemsize = dtype.itemsize
    min_sublane = max(8, 32 // itemsize)   # 8 for f32/int32, 16 for bf16/f16

    gen = _tpu_generation()
    multi_core = gen is not None and gen >= 7
    target_block_bytes = (8 << 20) if multi_core else (4 << 20)
    max_hw_tile = 32768 if multi_core else 16384

    row_tile, hw_tile = _choose_tiles(
        rows, hw, itemsize, min_sublane,
        multi_core=multi_core,
        target_block_bytes=target_block_bytes,
        max_hw_tile=max_hw_tile)

    num_row_tiles = pl.cdiv(rows, row_tile)
    num_hw_tiles = pl.cdiv(hw, hw_tile)

    kernel = _make_min_kernel(hw, hw_tile, num_hw_tiles, identity)

    out2d = pl.pallas_call(
        kernel,
        out_shape=jax.ShapeDtypeStruct((rows, 1), dtype),
        grid_spec=pltpu.PrefetchScalarGridSpec(
            num_scalar_prefetch=0,
            grid=(num_row_tiles, num_hw_tiles),
            in_specs=[pl.BlockSpec((row_tile, hw_tile), lambda i, k: (i, k))],
            out_specs=pl.BlockSpec((row_tile, 1), lambda i, k: (i, 0)),
        ),
        compiler_params=pltpu.CompilerParams(
            dimension_semantics=("parallel", "arbitrary"),
            # 2 x block (double-buffered input) + tiny output; safely below
            # physical VMEM on v5e/v6e (128 MiB) and v7x (64 MiB).
            vmem_limit_bytes=32 << 20,
        ),
    )(x2d)

    return out2d.reshape(B, C, 1, 1)


if __name__ == "__main__":
    key = jax.random.PRNGKey(0)
    k1, k2, k3, k4 = jax.random.split(key, 4)

    def ref_min(x):
        B, C, H, W = x.shape
        return jnp.min(x.reshape(B, C, -1), axis=-1, keepdims=True)[..., None]

    # 1) Spec-sized input (default path; tiny so it short-circuits to jnp).
    x1 = jax.random.normal(k1, (2, 4, 16, 16), dtype=jnp.float32)
    out1 = jax.block_until_ready(global_min_pool2d(x1))
    assert out1.shape == (2, 4, 1, 1), out1.shape
    assert jnp.allclose(out1, ref_min(x1)), "mismatch (default path)"

    # 2) Same input forced through the Pallas kernel.
    out2 = jax.block_until_ready(global_min_pool2d(x1, min_pallas_bytes=0))
    assert jnp.allclose(out2, ref_min(x1)), "mismatch (forced pallas, small)"

    # 3) Ragged rows (B*C=15 not a multiple of 8) and odd spatial size.
    x3 = jax.random.normal(k2, (3, 5, 17, 19), dtype=jnp.float32)
    out3 = jax.block_until_ready(global_min_pool2d(x3, min_pallas_bytes=0))
    assert out3.shape == (3, 5, 1, 1), out3.shape
    assert jnp.allclose(out3, ref_min(x3)), "mismatch (ragged rows)"

    # 4) Spatial tiling path: H*W = 17280 > 16384 -> >=2 hw tiles, peeled
    #    masked tail step (on v7x the 32K hw tile keeps this a single step,
    #    which is also correct).
    x4 = jax.random.normal(k3, (1, 8, 144, 120), dtype=jnp.float32)
    out4 = jax.block_until_ready(global_min_pool2d(x4, min_pallas_bytes=0))
    assert jnp.allclose(out4, ref_min(x4)), "mismatch (hw-tiled accumulator)"

    # 5) bf16 path (native-dtype reduce, row tile multiple of 16).
    x5 = jax.random.normal(k4, (2, 16, 32, 32), dtype=jnp.bfloat16)
    out5 = jax.block_until_ready(global_min_pool2d(x5, min_pallas_bytes=0))
    assert jnp.allclose(out5.astype(jnp.float32),
                        ref_min(x5).astype(jnp.float32)), "mismatch (bf16)"

    print("KERNEL_OK")
</pallas_src>

<mosaic_0001>
module attributes {stable_mosaic.version = 11 : i64} {
  func.func @kernel(%arg0: i32, %arg1: i32, %arg2: memref<8x256xf32, #tpu.memory_space<vmem>>, %arg3: memref<8x1xf32, #tpu.memory_space<vmem>>) attributes {dimension_semantics = [#tpu.dimension_semantics<parallel>, #tpu.dimension_semantics<arbitrary>], iteration_bounds = array<i64: 1, 1>, scalar_prefetch = 0 : i64, scratch_operands = 0 : i64, tpu.core_type = #tpu.core_type<tc>, window_params = [{transform_indices = @transform_0, window_bounds = array<i64: 8, 256>}, {transform_indices = @transform_1, window_bounds = array<i64: 8, 1>}]} {
    %c0 = arith.constant 0 : index
    %c0_0 = arith.constant 0 : index
    %0 = vector.load %arg2[%c0, %c0_0] : memref<8x256xf32, #tpu.memory_space<vmem>>, vector<8x256xf32>
    %cst = arith.constant dense<0x7F800000> : vector<8xf32>
    %1 = vector.multi_reduction <minimumf>, %0, %cst [1] : vector<8x256xf32> to vector<8xf32>
    %2 = vector.shape_cast %1 : vector<8xf32> to vector<8x1xf32>
    %c0_1 = arith.constant 0 : index
    %c0_2 = arith.constant 0 : index
    %3 = vector.load %arg3[%c0_1, %c0_2] : memref<8x1xf32, #tpu.memory_space<vmem>>, vector<8x1xf32>
    tpu.vector_store %arg3[%c0_1, %c0_2], %2 {strides = array<i32>} : memref<8x1xf32, #tpu.memory_space<vmem>>, vector<8x1xf32>,
    return
  }
  func.func @transform_0(%arg0: i32, %arg1: i32) -> (i32, i32) {
    %c0_i32 = arith.constant 0 : i32
    return %arg0, %arg1 : i32, i32
  }
  func.func @transform_1(%arg0: i32, %arg1: i32) -> (i32, i32) {
    %c0_i32 = arith.constant 0 : i32
    %c0_i32_0 = arith.constant 0 : i32
    return %arg0, %c0_i32 : i32, i32
  }
}

</mosaic_0001>

<bundles_post_ra>
// kernel: tpu_custom_call.1
= control target key start
LH: loop header
LB: loop body
LE: loop exit
PB: predicated region body
PF: predicated region fallthrough
CT: control target
= control target key end

     0   :  { %6 = vsyncpa [#allocation3], 0  ;;  %s61_s9 = smov [#allocation2]   ;;  %s78_s0 = inlined_call_operand.hbm [shape: f32[8,256], index: 0, kind: input, shape index: {}]   ;;  %s79_s1 = inlined_call_operand.vmem [shape: f32[8,1], index: 1, kind: output, shape index: {}]  }
   0x1   :  { %s12_s8 = sshll.u32 %s78_s0, 4  ;;  %s14_s10 = sshll.u32 %s61_s9, 4  ;;  %s13_s8 = int_to_ptr.hbm [resolvable:$true] %s12_s8  ;;  %s15_s10 = int_to_ptr.vmem [resolvable:$true] %s14_s10 }
   0x2   :  { %17 = dma.hbm_to_vmem [thread:$0]  %s13_s8, 256, %s15_s10, [#allocation3]  }
   0x3   :  { %59 = dma.done.wait [#allocation3], 256  }
   0x4   :  { %60 = vsyncadd [#allocation3], 4294967040  ;;  %v22_v0 = vld [vmem:[#allocation2] sm:$0xff]  ;;  %v23_v1 = vld [vmem:[#allocation2 + $0x8] sm:$0xff]  ;;  %vm27_vm0 = vcmask 7168  }
   0x5   :  { %v24_v2 = vmin.f32 %v22_v0, %v23_v1 }
   0x7   :  { %25 = vmin.xlane.f32.xlu0 %v24_v2 }
  0x7a   :  { %v26_v3 = vpop.xlane.xlu0 %25 }
  0x7b   :  { %28 = vst.msk [vmem:[%s79_s1] sm:$0xff] %vm27_vm0, %v26_v3 }
  0x7c   :  { %33 = vsyncpa [#allocation3], 1 }

</bundles_post_ra>
